<compile_context>
chip_gen: v6e
topology: v6e:2x2x1
jax: 0.10.0
libtpu: 0.0.40
codegen_flags: <defaults>
</compile_context>

<pallas_src>
import jax
import jax.numpy as jnp
from jax import lax
from jax.experimental import pallas as pl
from jax.experimental.pallas import tpu as pltpu


def _mlp_kernel(x_ref, w1_ref, b1_ref, w2_ref, b2_ref, o_ref):
    # Layer 1 on the MXU: cast the f32 x tile to bf16 in-register (saves a full
    # HBM read+write of x in the wrapper); W1^T is pre-transposed bf16. f32 accum.
    x = x_ref[...].astype(jnp.bfloat16)
    h = jnp.dot(x, w1_ref[...], preferred_element_type=jnp.float32)   # (tile_b, H)
    h = jnp.maximum(h + b1_ref[...], 0.0)                             # f32 VPU (v5e-safe)
    # Layer 2 (N == 1) also on the MXU: contract H between w2 (1, H) and h
    # (tile_b, H) -> lane-dense (1, tile_b) row, stored with unmasked vst.
    out_row = lax.dot_general(
        w2_ref[...], h,
        dimension_numbers=(((1,), (1,)), ((), ())),
        preferred_element_type=jnp.float32)                           # (1, tile_b)
    o_ref[...] = out_row + b2_ref[0]                                  # scalar bias from SMEM


def mlp_forward(x, w1, b1, w2, b2, *, tile_b=512):
    """relu(x @ w1.T + b1) @ w2.T + b2, PyTorch-layout weights (w1: [H, D], w2: [1, H])."""
    B, D = x.shape
    H = w1.shape[0]

    # Batch tile: big (amortizes per-step overhead; mem-bound kernels hit ~85% of HBM
    # roofline at 512-row tiles vs ~29% at 128), multiple of 128 so the lane-dense
    # output blocks need no masking, and capped so medium batches still give >= 2
    # grid steps (v7x: 2 TensorCores share the "parallel" batch axis).
    tile_b = max(128, (min(tile_b, 1024) // 128) * 128)
    if B <= 256:
        tile_b = B                                      # one exact block, nothing ragged
    else:
        tile_b = min(tile_b, max(128, (B // 2) // 128 * 128))
    num_tiles = pl.cdiv(B, tile_b)
    padded_b = num_tiles * tile_b

    # Weight prep (tiny; constant-folds / fuses under jit).
    w1t_bf16 = jnp.transpose(w1).astype(jnp.bfloat16)   # (D, H), MXU-ready
    b1_2d = b1.reshape(1, H).astype(jnp.float32)
    w2_2d = w2.reshape(1, H).astype(jnp.float32)
    b2_1d = b2.reshape(1).astype(jnp.float32)

    out = pl.pallas_call(
        _mlp_kernel,
        out_shape=jax.ShapeDtypeStruct((1, padded_b), jnp.float32),
        grid=(num_tiles,),
        in_specs=[
            pl.BlockSpec((tile_b, D), lambda i: (i, 0)),     # x tile (pipelined, f32 from HBM)
            pl.BlockSpec((D, H), lambda i: (0, 0)),          # W1^T   (VMEM-resident)
            pl.BlockSpec((1, H), lambda i: (0, 0)),          # b1     (VMEM-resident)
            pl.BlockSpec((1, H), lambda i: (0, 0)),          # W2 row (VMEM-resident)
            pl.BlockSpec((1,), lambda i: (0,),
                         memory_space=pltpu.SMEM),           # b2 scalar (1-D SMEM)
        ],
        out_specs=pl.BlockSpec((1, tile_b), lambda i: (0, i)),  # lane-dense output row
        compiler_params=pltpu.CompilerParams(
            dimension_semantics=("parallel",),
        ),
    )(x, w1t_bf16, b1_2d, w2_2d, b2_1d)

    # Tail rows of a ragged last block are garbage by construction; slice them off
    # before anything downstream can reduce over them.
    return out[0, :B][:, None]


def init_mlp_params(key, input_size, hidden=128, out=1):
    """Deterministic PyTorch-style (uniform +/- 1/sqrt(fan_in)) init."""
    k1, k2, k3, k4 = jax.random.split(key, 4)
    bound1 = 1.0 / (input_size ** 0.5)
    bound2 = 1.0 / (hidden ** 0.5)
    w1 = jax.random.uniform(k1, (hidden, input_size), jnp.float32, -bound1, bound1)
    b1 = jax.random.uniform(k2, (hidden,), jnp.float32, -bound1, bound1)
    w2 = jax.random.uniform(k3, (out, hidden), jnp.float32, -bound2, bound2)
    b2 = jax.random.uniform(k4, (out,), jnp.float32, -bound2, bound2)
    return w1, b1, w2, b2


if __name__ == "__main__":
    key = jax.random.PRNGKey(0)
    kx, kp = jax.random.split(key)

    batch, input_size = 200, 32
    x = jax.random.normal(kx, (batch, input_size), jnp.float32)
    w1, b1, w2, b2 = init_mlp_params(kp, input_size)

    fwd = jax.jit(mlp_forward)

    # Reference in plain JAX, with the same bf16 quantization of the layer-1 MXU
    # operands so the comparison is tight.
    w1_q = w1.astype(jnp.bfloat16).astype(jnp.float32)

    # Case 1: small batch -> single exact block (no ragged tail).
    out = jax.block_until_ready(fwd(x, w1, b1, w2, b2))
    x_q = x.astype(jnp.bfloat16).astype(jnp.float32)
    ref = jnp.maximum(x_q @ w1_q.T + b1, 0.0) @ w2.T + b2
    assert out.shape == (batch, 1)
    assert jnp.allclose(out, ref, atol=2e-3, rtol=2e-3), "mismatch vs reference (single block)"

    # Case 2: multi-tile grid with a ragged last block (exercises partial-block path).
    batch2 = 1200
    x2 = jax.random.normal(kx, (batch2, input_size), jnp.float32)
    out2 = jax.block_until_ready(fwd(x2, w1, b1, w2, b2))
    x2_q = x2.astype(jnp.bfloat16).astype(jnp.float32)
    ref2 = jnp.maximum(x2_q @ w1_q.T + b1, 0.0) @ w2.T + b2
    assert out2.shape == (batch2, 1)
    assert jnp.allclose(out2, ref2, atol=2e-3, rtol=2e-3), "mismatch vs reference (multi-tile)"

    print("KERNEL_OK")
</pallas_src>

<mosaic_0001>
module attributes {stable_mosaic.version = 11 : i64} {
  func.func @_mlp_kernel(%arg0: i32, %arg1: memref<200x32xf32, #tpu.memory_space<vmem>>, %arg2: memref<32x128xbf16, #tpu.memory_space<vmem>>, %arg3: memref<1x128xf32, #tpu.memory_space<vmem>>, %arg4: memref<1x128xf32, #tpu.memory_space<vmem>>, %arg5: memref<1xf32, #tpu.memory_space<smem>>, %arg6: memref<1x200xf32, #tpu.memory_space<vmem>>) attributes {dimension_semantics = [#tpu.dimension_semantics<parallel>], iteration_bounds = array<i64: 1>, scalar_prefetch = 0 : i64, scratch_operands = 0 : i64, tpu.core_type = #tpu.core_type<tc>, window_params = [{transform_indices = @transform_0, window_bounds = array<i64: 200, 32>}, {pipeline_mode = #tpu.pipeline_mode<synchronous>, transform_indices = @transform_1, window_bounds = array<i64: 32, 128>}, {pipeline_mode = #tpu.pipeline_mode<synchronous>, transform_indices = @transform_2, window_bounds = array<i64: 1, 128>}, {pipeline_mode = #tpu.pipeline_mode<synchronous>, transform_indices = @transform_3, window_bounds = array<i64: 1, 128>}, {transform_indices = @transform_4, window_bounds = array<i64: 1>}, {transform_indices = @transform_5, window_bounds = array<i64: 1, 200>}]} {
    %c0 = arith.constant 0 : index
    %c0_0 = arith.constant 0 : index
    %0 = vector.load %arg1[%c0, %c0_0] : memref<200x32xf32, #tpu.memory_space<vmem>>, vector<200x32xf32>
    %1 = arith.truncf %0 : vector<200x32xf32> to vector<200x32xbf16>
    %c0_1 = arith.constant 0 : index
    %c0_2 = arith.constant 0 : index
    %2 = vector.load %arg2[%c0_1, %c0_2] : memref<32x128xbf16, #tpu.memory_space<vmem>>, vector<32x128xbf16>
    %cst = arith.constant dense<0.000000e+00> : vector<200x128xf32>
    %3 = tpu.matmul %1, %2, %cst {dimension_numbers = #tpu.dot_dimension_numbers<[1], [0], [0], [1], [0, 0, 1, 1], [], []>} : vector<200x32xbf16>, vector<32x128xbf16>, vector<200x128xf32> -> vector<200x128xf32>
    %c0_3 = arith.constant 0 : index
    %c0_4 = arith.constant 0 : index
    %4 = vector.load %arg3[%c0_3, %c0_4] : memref<1x128xf32, #tpu.memory_space<vmem>>, vector<1x128xf32>
    %5 = vector.broadcast %4 : vector<1x128xf32> to vector<200x128xf32>
    %6 = arith.addf %3, %5 : vector<200x128xf32>
    %cst_5 = arith.constant 0.000000e+00 : f32
    %7 = vector.broadcast %cst_5 : f32 to vector<200x128xf32>
    %8 = arith.maximumf %6, %7 : vector<200x128xf32>
    %c0_6 = arith.constant 0 : index
    %c0_7 = arith.constant 0 : index
    %9 = vector.load %arg4[%c0_6, %c0_7] : memref<1x128xf32, #tpu.memory_space<vmem>>, vector<1x128xf32>
    %cst_8 = arith.constant dense<0.000000e+00> : vector<1x200xf32>
    %10 = tpu.matmul %9, %8, %cst_8 {dimension_numbers = #tpu.dot_dimension_numbers<[1], [1], [0], [0], [0, 0, 1, 0], [], []>} : vector<1x128xf32>, vector<200x128xf32>, vector<1x200xf32> -> vector<1x200xf32>
    %c0_9 = arith.constant 0 : index
    %11 = memref.load %arg5[%c0_9] : memref<1xf32, #tpu.memory_space<smem>>
    %12 = vector.broadcast %11 : f32 to vector<1x200xf32>
    %13 = arith.addf %10, %12 : vector<1x200xf32>
    %c0_10 = arith.constant 0 : index
    %c0_11 = arith.constant 0 : index
    %14 = vector.load %arg6[%c0_10, %c0_11] : memref<1x200xf32, #tpu.memory_space<vmem>>, vector<1x200xf32>
    tpu.vector_store %arg6[%c0_10, %c0_11], %13 {strides = array<i32>} : memref<1x200xf32, #tpu.memory_space<vmem>>, vector<1x200xf32>,
    return
  }
  func.func @transform_0(%arg0: i32) -> (i32, i32) {
    %c0_i32 = arith.constant 0 : i32
    %c0_i32_0 = arith.constant 0 : i32
    return %arg0, %c0_i32 : i32, i32
  }
  func.func @transform_1(%arg0: i32) -> (i32, i32) {
    %c0_i32 = arith.constant 0 : i32
    %c0_i32_0 = arith.constant 0 : i32
    %c0_i32_1 = arith.constant 0 : i32
    return %c0_i32, %c0_i32_0 : i32, i32
  }
  func.func @transform_2(%arg0: i32) -> (i32, i32) {
    %c0_i32 = arith.constant 0 : i32
    %c0_i32_0 = arith.constant 0 : i32
    %c0_i32_1 = arith.constant 0 : i32
    return %c0_i32, %c0_i32_0 : i32, i32
  }
  func.func @transform_3(%arg0: i32) -> (i32, i32) {
    %c0_i32 = arith.constant 0 : i32
    %c0_i32_0 = arith.constant 0 : i32
    %c0_i32_1 = arith.constant 0 : i32
    return %c0_i32, %c0_i32_0 : i32, i32
  }
  func.func @transform_4(%arg0: i32) -> i32 {
    %c0_i32 = arith.constant 0 : i32
    %c0_i32_0 = arith.constant 0 : i32
    return %c0_i32 : i32
  }
  func.func @transform_5(%arg0: i32) -> (i32, i32) {
    %c0_i32 = arith.constant 0 : i32
    %c0_i32_0 = arith.constant 0 : i32
    return %c0_i32, %arg0 : i32, i32
  }
}

</mosaic_0001>

<bundles_post_ra>
// kernel: mlp_forward.1
= control target key start
LH: loop header
LB: loop body
LE: loop exit
PB: predicated region body
PF: predicated region fallthrough
CT: control target
= control target key end

     0   :  { %v511_v1 = vmov 0.0   ;;  %vm512_vm0 = vmmov 0   ;;  %vm84_vm1 = vcmask 261120   ;;  %s768_s0 = inlined_call_operand.vmem [shape: f32[200,32], index: 0, kind: input, shape index: {}]   ;;  %s769_s1 = inlined_call_operand.vmem [shape: bf16[32,128], index: 1, kind: input, shape index: {}]   ;;  %s770_s2 = inlined_call_operand.vmem [shape: f32[1,128], index: 2, kind: input, shape index: {}]   ;;  %s771_s3 = inlined_call_operand.vmem [shape: f32[1,128], index: 3, kind: input, shape index: {}]   ;;  %s772_s4 = inlined_call_operand.<no memory space> [shape: f32[1], index: 4, kind: input, shape index: {}]   ;;  %s773_s5 = inlined_call_operand.hbm [shape: f32[1,200], index: 5, kind: output, shape index: {}]  }
   0x1   :  { %v487_v0 = vld [vmem:[%s769_s1 + $0x8] sm:$0xff]   ;;  %427 = vmatprep.subr.bf16.mxu0 %v511_v1  ;;  %288 = vmatprep.subr.mxu1 %v511_v1  ;;  %v488_v2 = vld [vmem:[%s769_s1] sm:$0xff]   ;;  %v25_v6 = vld [vmem:[%s768_s0 + $0x10] sm:$0xff] }
   0x2   :  { %428 = vmatpush3.bf16.msra.mxu0 %v487_v0  ;;  %431 = vmatprep.mubr.msk.bf16.mxu0 %vm512_vm0, %v511_v1  ;;  %v23_v3 = vld [vmem:[%s768_s0] sm:$0xff]  ;;  %v24_v4 = vld [vmem:[%s768_s0 + $0x8] sm:$0xff]  ;;  %v26_v7 = vld [vmem:[%s768_s0 + $0x18] sm:$0xff] }
   0x3   :  { %429 = vmatprep.subr.bf16.mxu0 %v511_v1  ;;  %352 = vmatprep.mubr.f32.mxu1 %v511_v1  ;;  %v48_v5 = vpack.c.bf16 %v24_v4, %v23_v3 }
   0x6   :  { %430 = vmatpush3.bf16.msra.mxu0 %v488_v2 }
   0x9   :  { %432 = vmatmul.mubr.msk.bf16.vlgmr.msra.gmra.mxu0 %vm84_vm1, %v48_v5 }
   0xa   :  { %435 = vmatprep.mubr.msk.bf16.mxu0 %vm512_vm0, %v511_v1 }
   0xb   :  { %11 = vsyncpa [#allocation4], 0  ;;  %v49_v8 = vpack.c.bf16 %v26_v7, %v25_v6  ;;  %v27_v9 = vld [vmem:[%s768_s0 + $0x20] sm:$0xff]  ;;  %v28_v10 = vld [vmem:[%s768_s0 + $0x28] sm:$0xff]  ;;  %s514_s24 = smov [#allocation3]  }
   0xc   :  { %v50_v11 = vpack.c.bf16 %v28_v10, %v27_v9  ;;  %v29_v12 = vld [vmem:[%s768_s0 + $0x30] sm:$0xff]  ;;  %v30_v13 = vld [vmem:[%s768_s0 + $0x38] sm:$0xff]  ;;  %v31_v15 = vld [vmem:[%s768_s0 + $0x40] sm:$0xff]  ;;  %s388_s25 = sshll.u32 %s514_s24, 4  ;;  %s389_s25 = int_to_ptr.vmem [resolvable:$true] %s388_s25 }
   0xd   :  { %v51_v14 = vpack.c.bf16 %v30_v13, %v29_v12  ;;  %v32_v16 = vld [vmem:[%s768_s0 + $0x48] sm:$0xff]  ;;  %v33_v18 = vld [vmem:[%s768_s0 + $0x50] sm:$0xff]  ;;  %v34_v19 = vld [vmem:[%s768_s0 + $0x58] sm:$0xff]  ;;  %p494_p1 = scmp.lt.s32.totalorder %s389_s25, %s389_s25 }
   0xe   :  { %v52_v17 = vpack.c.bf16 %v32_v16, %v31_v15  ;;  %v53_v20 = vpack.c.bf16 %v34_v19, %v33_v18  ;;  %v35_v21 = vld [vmem:[%s768_s0 + $0x60] sm:$0xff]  ;;  %v36_v22 = vld [vmem:[%s768_s0 + $0x68] sm:$0xff]  ;;  %v37_v24 = vld [vmem:[%s768_s0 + $0x70] sm:$0xff] }
   0xf   :  { %v54_v23 = vpack.c.bf16 %v36_v22, %v35_v21  ;;  %v38_v25 = vld [vmem:[%s768_s0 + $0x78] sm:$0xff]  ;;  %v39_v27 = vld [vmem:[%s768_s0 + $0x80] sm:$0xff]  ;;  %v40_v28 = vld [vmem:[%s768_s0 + $0x88] sm:$0xff] }
  0x10   :  { %v55_v26 = vpack.c.bf16 %v38_v25, %v37_v24  ;;  %v56_v29 = vpack.c.bf16 %v40_v28, %v39_v27  ;;  %v41_v30 = vld [vmem:[%s768_s0 + $0x90] sm:$0xff]  ;;  %v42_v31 = vld [vmem:[%s768_s0 + $0x98] sm:$0xff]  ;;  %v43_v33 = vld [vmem:[%s768_s0 + $0xa0] sm:$0xff] }
  0x11   :  { %436 = vmatmul.mubr.msk.bf16.gmra.mxu0 %vm84_vm1, %v49_v8  ;;  %v57_v32 = vpack.c.bf16 %v42_v31, %v41_v30  ;;  %v44_v34 = vld [vmem:[%s768_s0 + $0xa8] sm:$0xff]  ;;  %v45_v36 = vld [vmem:[%s768_s0 + $0xb0] sm:$0xff]  ;;  %v46_v37 = vld [vmem:[%s768_s0 + $0xb8] sm:$0xff] }
  0x12   :  { %439 = vmatprep.mubr.msk.bf16.mxu0 %vm512_vm0, %v511_v1  ;;  %v58_v35 = vpack.c.bf16 %v44_v34, %v43_v33  ;;  %v59_v38 = vpack.c.bf16 %v46_v37, %v45_v36  ;;  %v47_v39 = vld [vmem:[%s768_s0 + $0xc0] sm:$0xff] }
  0x13   :  { %v60_v40 = vpack.c.bf16 %v47_v39, %v47_v39  ;;  %v686_v8 = vld [vmem:[%s770_s2] ss:$0 sm:$0xff] }
  0x19   :  { %440 = vmatmul.mubr.msk.bf16.gmra.mxu0 %vm84_vm1, %v50_v11 }
  0x1a   :  { %443 = vmatprep.mubr.msk.bf16.mxu0 %vm512_vm0, %v511_v1 }
  0x21   :  { %444 = vmatmul.mubr.msk.bf16.gmra.mxu0 %vm84_vm1, %v51_v14 }
  0x22   :  { %447 = vmatprep.mubr.msk.bf16.mxu0 %vm512_vm0, %v511_v1 }
  0x29   :  { %448 = vmatmul.mubr.msk.bf16.gmra.mxu0 %vm84_vm1, %v52_v17 }
  0x2a   :  { %451 = vmatprep.mubr.msk.bf16.mxu0 %vm512_vm0, %v511_v1 }
  0x31   :  { %452 = vmatmul.mubr.msk.bf16.gmra.mxu0 %vm84_vm1, %v53_v20 }
  0x32   :  { %455 = vmatprep.mubr.msk.bf16.mxu0 %vm512_vm0, %v511_v1 }
  0x39   :  { %456 = vmatmul.mubr.msk.bf16.gmra.mxu0 %vm84_vm1, %v54_v23 }
  0x3a   :  { %459 = vmatprep.mubr.msk.bf16.mxu0 %vm512_vm0, %v511_v1 }
  0x41   :  { %460 = vmatmul.mubr.msk.bf16.gmra.mxu0 %vm84_vm1, %v55_v26 }
  0x42   :  { %463 = vmatprep.mubr.msk.bf16.mxu0 %vm512_vm0, %v511_v1 }
  0x49   :  { %464 = vmatmul.mubr.msk.bf16.gmra.mxu0 %vm84_vm1, %v56_v29 }
  0x4a   :  { %467 = vmatprep.mubr.msk.bf16.mxu0 %vm512_vm0, %v511_v1 }
  0x51   :  { %468 = vmatmul.mubr.msk.bf16.gmra.mxu0 %vm84_vm1, %v57_v32 }
  0x52   :  { %471 = vmatprep.mubr.msk.bf16.mxu0 %vm512_vm0, %v511_v1 }
  0x59   :  { %472 = vmatmul.mubr.msk.bf16.gmra.mxu0 %vm84_vm1, %v58_v35 }
  0x5a   :  { %475 = vmatprep.mubr.msk.bf16.mxu0 %vm512_vm0, %v511_v1 }
  0x61   :  { %476 = vmatmul.mubr.msk.bf16.gmra.mxu0 %vm84_vm1, %v59_v38 }
  0x62   :  { %479 = vmatprep.mubr.msk.bf16.mxu0 %vm512_vm0, %v511_v1 }
  0x69   :  { %480 = vmatmul.mubr.msk.bf16.gmra.mxu0 %vm84_vm1, %v60_v40 }
  0xc9   :  { %v669_v41 = vpop.f32.mrf.mxu0 }
  0xcb   :  { %v433_v42 = vpop.f32.mrf.mxu0 }
  0xcd   :  { %v671_v43 = vpop.f32.mrf.mxu0 }
  0xcf   :  { %v434_v44 = vpop.f32.mrf.mxu0 }
  0xd1   :  { %v673_v45 = vpop.f32.mrf.mxu0 }
  0xd3   :  { %v437_v46 = vpop.f32.mrf.mxu0 }
  0xd5   :  { %v675_v47 = vpop.f32.mrf.mxu0 }
  0xd7   :  { %v438_v48 = vpop.f32.mrf.mxu0 }
  0xd9   :  { %v677_v49 = vpop.f32.mrf.mxu0 }
  0xdb   :  { %v441_v50 = vpop.f32.mrf.mxu0 }
  0xdd   :  { %v679_v51 = vpop.f32.mrf.mxu0 }
  0xdf   :  { %v442_v52 = vpop.f32.mrf.mxu0 }
  0xe1   :  { %v681_v53 = vpop.f32.mrf.mxu0 }
  0xe2   :  { %v183_v48 = vadd.f32 %v686_v8, %v681_v53  ;;  %v170_v53 = vadd.f32 %v686_v8, %v675_v47  ;;  %v159_v47 = vadd.f32 %v686_v8, %v669_v41 }
  0xe3   :  { %v445_v54 = vpop.f32.mrf.mxu0 }
  0xe5   :  { %v185_v55 = vpop.f32.mrf.mxu0 }
  0xe6   :  { %v186_v40 = vadd.f32 %v686_v8, %v185_v55 }
  0xe7   :  { %v446_v56 = vpop.f32.mrf.mxu0 }
  0xe8   :  { %v267_v50 = vmax.f32 %v186_v40, 0.0  ;;  %v178_v56 = vadd.f32 %v686_v8, %v679_v51  ;;  %v167_v51 = vadd.f32 %v686_v8, %v673_v45  ;;  %v260_v45 = vmax.f32 %v159_v47, 0.0 }
  0xe9   :  { %v190_v57 = vpop.f32.mrf.mxu0 }
  0xea   :  { %v191_v36 = vadd.f32 %v686_v8, %v190_v57  ;;  %v266_v57 = vmax.f32 %v183_v48, 0.0 }
  0xeb   :  { %v449_v58 = vpop.f32.mrf.mxu0 }
  0xec   :  { %v268_v42 = vmax.f32 %v191_v36, 0.0 }
  0xed   :  { %v193_v59 = vpop.f32.mrf.mxu0 }
  0xee   :  { %v194_v32 = vadd.f32 %v686_v8, %v193_v59  ;;  %v175_v59 = vadd.f32 %v686_v8, %v677_v49  ;;  %v162_v49 = vadd.f32 %v686_v8, %v671_v43 }
  0xef   :  { %v450_v60 = vpop.f32.mrf.mxu0 }
  0xf0   :  { %v269_v37 = vmax.f32 %v194_v32, 0.0  ;;  %v265_v60 = vmax.f32 %v178_v56, 0.0 }
  0xf1   :  { %v198_v61 = vpop.f32.mrf.mxu0 }
  0xf2   :  { %v199_v28 = vadd.f32 %v686_v8, %v198_v61  ;;  %v264_v61 = vmax.f32 %v175_v59, 0.0 }
  0xf3   :  { %v453_v62 = vpop.f32.mrf.mxu0 }
  0xf4   :  { %v270_v33 = vmax.f32 %v199_v28, 0.0  ;;  %v263_v62 = vmax.f32 %v170_v53, 0.0 }
  0xf5   :  { %v201_v63 = vpop.f32.mrf.mxu0 }
  0xf6   :  { %v202_v24 = vadd.f32 %v686_v8, %v201_v63  ;;  %v262_v63 = vmax.f32 %v167_v51, 0.0 }
  0xf7   :  { %v454_v0 = vpop.f32.mrf.mxu0 }
  0xf8   :  { %v271_v29 = vmax.f32 %v202_v24, 0.0  ;;  %v261_v0 = vmax.f32 %v162_v49, 0.0 }
  0xf9   :  { %v206_v2 = vpop.f32.mrf.mxu0 }
  0xfa   :  { %v207_v20 = vadd.f32 %v686_v8, %v206_v2 }
  0xfb   :  { %v457_v3 = vpop.f32.mrf.mxu0 }
  0xfc   :  { %v272_v25 = vmax.f32 %v207_v20, 0.0 }
  0xfd   :  { %v209_v4 = vpop.f32.mrf.mxu0 }
  0xfe   :  { %v210_v16 = vadd.f32 %v686_v8, %v209_v4 }
  0xff   :  { %v458_v5 = vpop.f32.mrf.mxu0 }
 0x100   :  { %v273_v21 = vmax.f32 %v210_v16, 0.0 }
 0x101   :  { %v214_v6 = vpop.f32.mrf.mxu0 }
 0x102   :  { %v215_v12 = vadd.f32 %v686_v8, %v214_v6 }
 0x103   :  { %v461_v7 = vpop.f32.mrf.mxu0 }
 0x104   :  { %v274_v17 = vmax.f32 %v215_v12, 0.0 }
 0x105   :  { %v217_v9 = vpop.f32.mrf.mxu0 }
 0x106   :  { %v218_v10 = vadd.f32 %v686_v8, %v217_v9 }
 0x107   :  { %v462_v11 = vpop.f32.mrf.mxu0 }
 0x108   :  { %v275_v13 = vmax.f32 %v218_v10, 0.0 }
 0x109   :  { %v690_v14 = vpop.f32.mrf.mxu0 }
 0x10a   :  { %289 = vmatpush1.xpose.msra.mxu1 %v275_v13 }
 0x10b   :  { %290 = vmatprep.subr.mxu1 %v511_v1  ;;  %v465_v15 = vpop.f32.mrf.mxu0 }
 0x10d   :  { %v694_v18 = vpop.f32.mrf.mxu0 }
 0x10e   :  { %291 = vmatpush1.xpose.msra.mxu1 %v274_v17  ;;  %v226_v15 = vadd.f32 %v686_v8, %v694_v18  ;;  %v223_v17 = vadd.f32 %v686_v8, %v690_v14 }
 0x10f   :  { %292 = vmatprep.subr.mxu1 %v511_v1  ;;  %v466_v19 = vpop.f32.mrf.mxu0 }
 0x110   :  { %v277_v19 = vmax.f32 %v226_v15, 0.0  ;;  %v276_v20 = vmax.f32 %v223_v17, 0.0 }
 0x111   :  { %v698_v22 = vpop.f32.mrf.mxu0 }
 0x112   :  { %293 = vmatpush1.xpose.msra.mxu1 %v273_v21  ;;  %v231_v12 = vadd.f32 %v686_v8, %v698_v22  ;;  %v285_v21 = vld [vmem:[%s771_s3] sm:$0x1]  ;;  %v513_v22 = vmov 1966171168   ;;  %s489_s3 = scalar_lea.vmem %s389_s25, 32 }
 0x113   :  { %294 = vmatprep.subr.mxu1 %v511_v1  ;;  %v469_v23 = vpop.f32.mrf.mxu0  ;;  %v363_v18 = vunpack.c.l.s4 %v513_v22  ;;  %p490_p0 = scmp.ne.s32.totalorder %s389_s25, %s489_s3  ;;  %p495_p2 = scmp.lt.s32.totalorder %s489_s3, %s489_s3 }
 0x114   :  { %v278_v16 = vmax.f32 %v231_v12, 0.0  ;;  %v365_v23 = vlaneseq }
 0x115   :  { %v702_v26 = vpop.f32.mrf.mxu0  ;;  %v364_v24 = vunpack.c.0.s8 %v363_v18  ;;  %p496_p3 = por %p495_p2, %p494_p1 }
 0x116   :  { %295 = vmatpush1.xpose.msra.mxu1 %v272_v25  ;;  %v234_v10 = vadd.f32 %v686_v8, %v702_v26  ;;  %v366_v25 = vshrl.u32 %v365_v23, 7  ;;  %vm379_vm2 = vcmp.lt.s32.totalorder %v365_v23, 200 }
 0x117   :  { %296 = vmatprep.subr.mxu1 %v511_v1  ;;  %v470_v27 = vpop.f32.mrf.mxu0  ;;  %p497_p4 = pnand %p496_p3, %p490_p0 }
 0x118   :  { %v279_v13 = vmax.f32 %v234_v10, 0.0  ;;  %v367_v28 = vsub.s32 %v364_v24, %v366_v25 }
 0x119   :  { %v706_v30 = vpop.f32.mrf.mxu0 }
 0x11a   :  { %297 = vmatpush1.xpose.msra.mxu1 %v271_v29  ;;  %v239_v7 = vadd.f32 %v686_v8, %v706_v30 }
 0x11b   :  { %298 = vmatprep.subr.mxu1 %v511_v1  ;;  %v473_v31 = vpop.f32.mrf.mxu0 }
 0x11c   :  { %v280_v11 = vmax.f32 %v239_v7, 0.0 }
 0x11d   :  { %v241_v34 = vpop.f32.mrf.mxu0 }
 0x11e   :  { %299 = vmatpush1.xpose.msra.mxu1 %v270_v33  ;;  %v242_v41 = vadd.f32 %v686_v8, %v241_v34 }
 0x11f   :  { %300 = vmatprep.subr.mxu1 %v511_v1  ;;  %v474_v35 = vpop.f32.mrf.mxu0 }
 0x120   :  { %v281_v9 = vmax.f32 %v242_v41, 0.0 }
 0x121   :  { %v246_v38 = vpop.f32.mrf.mxu0 }
 0x122   :  { %301 = vmatpush1.xpose.msra.mxu1 %v269_v37  ;;  %v247_v4 = vadd.f32 %v686_v8, %v246_v38 }
 0x123   :  { %302 = vmatprep.subr.mxu1 %v511_v1  ;;  %v477_v39 = vpop.f32.mrf.mxu0 }
 0x124   :  { %v282_v6 = vmax.f32 %v247_v4, 0.0 }
 0x125   :  { %v249_v44 = vpop.f32.mrf.mxu0 }
 0x126   :  { %303 = vmatpush1.xpose.msra.mxu1 %v268_v42  ;;  %v250_v43 = vadd.f32 %v686_v8, %v249_v44 }
 0x127   :  { %304 = vmatprep.subr.mxu1 %v511_v1  ;;  %v478_v46 = vpop.f32.mrf.mxu0 }
 0x128   :  { %v283_v5 = vmax.f32 %v250_v43, 0.0 }
 0x129   :  { %v254_v52 = vpop.f32.mrf.mxu0 }
 0x12a   :  { %305 = vmatpush1.xpose.msra.mxu1 %v267_v50  ;;  %v255_v2 = vadd.f32 %v686_v8, %v254_v52  ;;  %v287_v8 = vstv %s772_s4 }
 0x12b   :  { %306 = vmatprep.subr.mxu1 %v511_v1  ;;  %v481_v54 = vpop.f32.mrf.mxu0 }
 0x12c   :  { %v284_v3 = vmax.f32 %v255_v2, 0.0 }
 0x12d   :  { %v257_v55 = vpop.f32.mrf.mxu0 }
 0x12e   :  { %307 = vmatpush1.xpose.msra.mxu1 %v266_v57 }
 0x12f   :  { %308 = vmatprep.subr.mxu1 %v511_v1  ;;  %v482_v58 = vpop.f32.mrf.mxu0 }
 0x132   :  { %309 = vmatpush1.xpose.msra.mxu1 %v265_v60 }
 0x133   :  { %310 = vmatprep.subr.mxu1 %v511_v1 }
 0x136   :  { %311 = vmatpush1.xpose.msra.mxu1 %v264_v61 }
 0x137   :  { %312 = vmatprep.subr.mxu1 %v511_v1 }
 0x13a   :  { %313 = vmatpush1.xpose.msra.mxu1 %v263_v62 }
 0x13b   :  { %314 = vmatprep.subr.mxu1 %v511_v1 }
 0x13e   :  { %315 = vmatpush1.xpose.msra.mxu1 %v262_v63 }
 0x13f   :  { %316 = vmatprep.subr.mxu1 %v511_v1 }
 0x142   :  { %317 = vmatpush1.xpose.msra.mxu1 %v261_v0 }
 0x143   :  { %318 = vmatprep.subr.mxu1 %v511_v1 }
 0x146   :  { %319 = vmatpush1.xpose.msra.mxu1 %v260_v45 }
 0x147   :  { %334 = vmatprep.subr.mxu1 %v511_v1 }
 0x14a   :  { %335 = vmatpush2.xpose.msra.mxu1 %v284_v3 }
 0x14b   :  { %336 = vmatprep.subr.mxu1 %v511_v1 }
 0x14e   :  { %337 = vmatpush2.xpose.msra.mxu1 %v283_v5 }
 0x14f   :  { %338 = vmatprep.subr.mxu1 %v511_v1 }
 0x152   :  { %339 = vmatpush2.xpose.msra.mxu1 %v282_v6 }
 0x153   :  { %340 = vmatprep.subr.mxu1 %v511_v1 }
 0x156   :  { %341 = vmatpush2.xpose.msra.mxu1 %v281_v9 }
 0x157   :  { %342 = vmatprep.subr.mxu1 %v511_v1 }
 0x15a   :  { %343 = vmatpush2.xpose.msra.mxu1 %v280_v11 }
 0x15b   :  { %344 = vmatprep.subr.mxu1 %v511_v1 }
 0x15e   :  { %345 = vmatpush2.xpose.msra.mxu1 %v279_v13 }
 0x15f   :  { %346 = vmatprep.subr.mxu1 %v511_v1 }
 0x162   :  { %347 = vmatpush2.xpose.msra.mxu1 %v278_v16 }
 0x163   :  { %348 = vmatprep.subr.mxu1 %v511_v1 }
 0x166   :  { %349 = vmatpush2.xpose.msra.mxu1 %v277_v19 }
 0x167   :  { %350 = vmatprep.subr.mxu1 %v511_v1 }
 0x16a   :  { %351 = vmatpush2.xpose.msra.mxu1 %v276_v20 }
 0x16d   :  { %353 = vmatmul.mubr.f32.vlgmr.msra.gmra.mxu1 %v285_v21 }
 0x22d   :  { %v354_v14 = vpop.f32.mrf.mxu1 }
 0x22e   :  { %v355_v27 = vadd.f32 %v354_v14, %v287_v8 }
 0x22f   :  { %v356_v26 = vpop.f32.mrf.mxu1 }
 0x230   :  { %v357_v1 = vadd.f32 %v356_v26, %v287_v8 }
 0x232   :  { %v361_v29 = vcombine.low %v355_v27, %v357_v1 }
 0x234   :  { %v368_v30 = vrot.slane %v361_v29, %v367_v28 }
 0x236   :  { %v375_v31 = vrot.slane %v368_v30, %v367_v28 }
 0x238   :  { %381 = vst.msk [vmem:[#allocation3] sm:$0x3] %vm379_vm2, %v375_v31 }
 0x239   :  { %500 = shalt.err (!%p497_p4)
}
 0x23a   :  { %391 = dma.vmem_to_hbm [thread:$0]  %s389_s25, 32, %s773_s5, [#allocation4]  }
 0x23b   :  { %509 = dma.done.wait [#allocation4], 32  }
 0x23c   :  { %510 = vsyncadd [#allocation4], 4294967264 }
 0x23d   :  { %395 = vsyncpa [#allocation4], 1 }

</bundles_post_ra>
